<compile_context>
chip_gen: v5e
topology: v5e:2x2
jax: 0.10.0
libtpu: 0.0.40
codegen_flags: <defaults>
</compile_context>

<pallas_src>
import jax
import jax.numpy as jnp
from jax.experimental import pallas as pl
from jax.experimental.pallas import tpu as pltpu

LANE = 128
SUBLANE = 8


def _round_up(n, m):
    return ((n + m - 1) // m) * m


def _critic_kernel(x_ref, a_ref,
                   w1_ref, b1_ref,
                   w2h_ref, w2a_ref, b2_ref,
                   w3_ref, b3_ref,
                   o_ref):
    # fc1 + ReLU (bias add fused with the max in a single VPU pass).
    h1 = jnp.maximum(
        jnp.dot(x_ref[...], w1_ref[...], preferred_element_type=jnp.float32)
        + b1_ref[...], 0.0)

    # fc2 over concat([h1, a], 1), with the concat folded into two
    # contributions.  The action contribution has contraction size
    # K == nb_actions; for nb_actions == 1 it is a rank-1 outer product, so it
    # stays on the VPU ((TB,1) * (1,H2P) broadcast multiply) instead of
    # burning an MXU pass with K = 1.
    if a_ref.shape[1] == 1:
        a_part = a_ref[...] * w2a_ref[...]            # (TB,1)*(1,H2P) -> (TB,H2P)
    else:
        a_part = jnp.dot(a_ref[...], w2a_ref[...],
                         preferred_element_type=jnp.float32)

    h2 = jnp.maximum(
        jnp.dot(h1, w2h_ref[...], preferred_element_type=jnp.float32)
        + a_part + b2_ref[...], 0.0)

    # fc3: single output column -> VPU multiply + XLU lane reduction.
    # w3 is stored lane-dense as (1, H2P); padded lanes of h2/w3 are zero.
    o_ref[...] = (jnp.sum(h2 * w3_ref[...], axis=-1, keepdims=True)
                  + b3_ref[...])


def critic_forward(x, a, padded_params, tile_b=256):
    """x: (B, nb_states) f32, a: (B, nb_actions) f32 -> (B, 1) f32."""
    B, S = x.shape
    A = a.shape[1]
    p = padded_params
    SP, H1P = p["w1"].shape
    H2P = p["w2h"].shape[1]

    TILE_B = min(tile_b, _round_up(B, SUBLANE))
    Bp = _round_up(B, TILE_B)

    # Zero-pad batch rows and state-feature lanes (the padded weight rows are
    # zero, so padded feature columns contribute nothing).
    xp = jnp.zeros((Bp, SP), jnp.float32).at[:B, :S].set(x.astype(jnp.float32))
    ap = jnp.zeros((Bp, A), jnp.float32).at[:B, :].set(a.astype(jnp.float32))

    flops = 2 * Bp * (SP * H1P + H1P * H2P + A * H2P + H2P)
    bytes_accessed = 4 * (SP * H1P + H1P * H2P + A * H2P + H1P + 2 * H2P + 1
                          + Bp * (SP + A + 1))
    cost = pl.CostEstimate(flops=flops, transcendentals=0,
                           bytes_accessed=bytes_accessed)

    def const_spec(shape):
        # Full-array, constant block index -> weight stays VMEM-resident
        # across all batch grid steps (no re-DMA per step).
        return pl.BlockSpec(shape, lambda i: (0, 0))

    out = pl.pallas_call(
        _critic_kernel,
        out_shape=jax.ShapeDtypeStruct((Bp, 1), jnp.float32),
        grid_spec=pltpu.PrefetchScalarGridSpec(
            num_scalar_prefetch=0,
            grid=(Bp // TILE_B,),
            in_specs=[
                pl.BlockSpec((TILE_B, SP), lambda i: (i, 0)),   # x tile
                pl.BlockSpec((TILE_B, A), lambda i: (i, 0)),    # a tile
                const_spec((SP, H1P)),                          # w1
                const_spec((1, H1P)),                           # b1
                const_spec((H1P, H2P)),                         # w2h
                const_spec((A, H2P)),                           # w2a
                const_spec((1, H2P)),                           # b2
                const_spec((1, H2P)),                           # w3 (lane-dense row)
                const_spec((1, 1)),                             # b3
            ],
            out_specs=pl.BlockSpec((TILE_B, 1), lambda i: (i, 0)),
        ),
        compiler_params=pltpu.CompilerParams(
            dimension_semantics=("parallel",)),
        cost_estimate=cost,
    )(xp, ap,
      p["w1"], p["b1"],
      p["w2h"], p["w2a"], p["b2"],
      p["w3"], p["b3"])
    return out[:B]


def init_params(key, nb_states, nb_actions=1, init_w=0.003):
    """Unpadded params mirroring the PyTorch module's initialization.

    Weights are stored transposed as (in_features, out_features); w3 is stored
    as a lane-dense (1, 300) row."""
    k1, k2, k3, k4, k5, k6 = jax.random.split(key, 6)
    h1, h2 = 400, 300

    # fanin_init uses v = 1/sqrt(weight.size(0)) = 1/sqrt(out_features).
    v1 = 1.0 / jnp.sqrt(jnp.float32(h1))
    v2 = 1.0 / jnp.sqrt(jnp.float32(h2))
    # nn.Linear default bias init: uniform(+-1/sqrt(in_features)).
    bv1 = 1.0 / jnp.sqrt(jnp.float32(nb_states))
    bv2 = 1.0 / jnp.sqrt(jnp.float32(h1 + nb_actions))
    bv3 = 1.0 / jnp.sqrt(jnp.float32(h2))

    w1 = jax.random.uniform(k1, (nb_states, h1), jnp.float32, -v1, v1)
    b1 = jax.random.uniform(k2, (1, h1), jnp.float32, -bv1, bv1)

    w2 = jax.random.uniform(k3, (h1 + nb_actions, h2), jnp.float32, -v2, v2)
    w2h = w2[:h1, :]                      # multiplies h1
    w2a = w2[h1:, :]                      # multiplies the action a
    b2 = jax.random.uniform(k4, (1, h2), jnp.float32, -bv2, bv2)

    w3 = jax.random.uniform(k5, (1, h2), jnp.float32, -init_w, init_w)
    b3 = jax.random.uniform(k6, (1, 1), jnp.float32, -bv3, bv3)

    return dict(w1=w1, b1=b1, w2h=w2h, w2a=w2a, b2=b2, w3=w3, b3=b3)


def pad_params(p):
    """Zero-pad feature/hidden dims to multiples of 128 lanes.

    Padded weight rows/cols and padded bias entries are exactly zero, so the
    padded h1/h2 lanes stay zero through the ReLUs and do not leak into the
    fc3 lane reduction."""
    S, H1 = p["w1"].shape
    H2 = p["w2h"].shape[1]
    A = p["w2a"].shape[0]
    SP, H1P, H2P = (_round_up(S, LANE), _round_up(H1, LANE),
                    _round_up(H2, LANE))

    def pad(arr, shape):
        return jnp.zeros(shape, arr.dtype).at[:arr.shape[0],
                                              :arr.shape[1]].set(arr)

    return dict(
        w1=pad(p["w1"], (SP, H1P)),
        b1=pad(p["b1"], (1, H1P)),
        w2h=pad(p["w2h"], (H1P, H2P)),
        w2a=pad(p["w2a"], (A, H2P)),
        b2=pad(p["b2"], (1, H2P)),
        w3=pad(p["w3"], (1, H2P)),
        b3=p["b3"],
    )


def critic_reference(x, a, p):
    """Pure-JAX reference (unpadded params) for the correctness check."""
    h1 = jnp.maximum(x @ p["w1"] + p["b1"], 0.0)
    h2 = jnp.maximum(h1 @ p["w2h"] + a @ p["w2a"] + p["b2"], 0.0)
    return h2 @ p["w3"].T + p["b3"]


if __name__ == "__main__":
    B, nb_states, nb_actions = 2, 32, 1

    key = jax.random.PRNGKey(0)
    kx, ka, kp = jax.random.split(key, 3)
    x = jax.random.normal(kx, (B, nb_states), jnp.float32)
    a = jax.random.normal(ka, (B, nb_actions), jnp.float32)

    raw_params = init_params(kp, nb_states, nb_actions)
    padded_params = pad_params(raw_params)

    q = critic_forward(x, a, padded_params)
    jax.block_until_ready(q)

    q_ref = critic_reference(x, a, raw_params)
    assert q.shape == (B, 1)
    assert jnp.allclose(q, q_ref, atol=1e-4, rtol=1e-4)

    print("KERNEL_OK")
</pallas_src>

<mosaic_0001>
module attributes {stable_mosaic.version = 11 : i64} {
  func.func @_critic_kernel(%arg0: i32, %arg1: memref<8x128xf32, #tpu.memory_space<vmem>>, %arg2: memref<8x1xf32, #tpu.memory_space<vmem>>, %arg3: memref<128x512xf32, #tpu.memory_space<vmem>>, %arg4: memref<1x512xf32, #tpu.memory_space<vmem>>, %arg5: memref<512x384xf32, #tpu.memory_space<vmem>>, %arg6: memref<1x384xf32, #tpu.memory_space<vmem>>, %arg7: memref<1x384xf32, #tpu.memory_space<vmem>>, %arg8: memref<1x384xf32, #tpu.memory_space<vmem>>, %arg9: memref<1x1xf32, #tpu.memory_space<vmem>>, %arg10: memref<8x1xf32, #tpu.memory_space<vmem>>) attributes {dimension_semantics = [#tpu.dimension_semantics<parallel>], iteration_bounds = array<i64: 1>, scalar_prefetch = 0 : i64, scratch_operands = 0 : i64, tpu.core_type = #tpu.core_type<tc>, window_params = [{transform_indices = @transform_0, window_bounds = array<i64: 8, 128>}, {transform_indices = @transform_1, window_bounds = array<i64: 8, 1>}, {pipeline_mode = #tpu.pipeline_mode<synchronous>, transform_indices = @transform_2, window_bounds = array<i64: 128, 512>}, {pipeline_mode = #tpu.pipeline_mode<synchronous>, transform_indices = @transform_3, window_bounds = array<i64: 1, 512>}, {pipeline_mode = #tpu.pipeline_mode<synchronous>, transform_indices = @transform_4, window_bounds = array<i64: 512, 384>}, {pipeline_mode = #tpu.pipeline_mode<synchronous>, transform_indices = @transform_5, window_bounds = array<i64: 1, 384>}, {pipeline_mode = #tpu.pipeline_mode<synchronous>, transform_indices = @transform_6, window_bounds = array<i64: 1, 384>}, {pipeline_mode = #tpu.pipeline_mode<synchronous>, transform_indices = @transform_7, window_bounds = array<i64: 1, 384>}, {pipeline_mode = #tpu.pipeline_mode<synchronous>, transform_indices = @transform_8, window_bounds = array<i64: 1, 1>}, {transform_indices = @transform_9, window_bounds = array<i64: 8, 1>}]} {
    %c0 = arith.constant 0 : index
    %c0_0 = arith.constant 0 : index
    %0 = vector.load %arg1[%c0, %c0_0] : memref<8x128xf32, #tpu.memory_space<vmem>>, vector<8x128xf32>
    %c0_1 = arith.constant 0 : index
    %c0_2 = arith.constant 0 : index
    %1 = vector.load %arg3[%c0_1, %c0_2] : memref<128x512xf32, #tpu.memory_space<vmem>>, vector<128x512xf32>
    %cst = arith.constant dense<0.000000e+00> : vector<8x512xf32>
    %2 = tpu.matmul %0, %1, %cst {dimension_numbers = #tpu.dot_dimension_numbers<[1], [0], [0], [1], [0, 0, 1, 1], [], []>} : vector<8x128xf32>, vector<128x512xf32>, vector<8x512xf32> -> vector<8x512xf32>
    %c0_3 = arith.constant 0 : index
    %c0_4 = arith.constant 0 : index
    %3 = vector.load %arg4[%c0_3, %c0_4] : memref<1x512xf32, #tpu.memory_space<vmem>>, vector<1x512xf32>
    %4 = vector.broadcast %3 : vector<1x512xf32> to vector<8x512xf32>
    %5 = arith.addf %2, %4 : vector<8x512xf32>
    %cst_5 = arith.constant 0.000000e+00 : f32
    %6 = vector.broadcast %cst_5 : f32 to vector<8x512xf32>
    %7 = arith.maximumf %5, %6 : vector<8x512xf32>
    %c0_6 = arith.constant 0 : index
    %c0_7 = arith.constant 0 : index
    %8 = vector.load %arg2[%c0_6, %c0_7] : memref<8x1xf32, #tpu.memory_space<vmem>>, vector<8x1xf32>
    %c0_8 = arith.constant 0 : index
    %c0_9 = arith.constant 0 : index
    %9 = vector.load %arg6[%c0_8, %c0_9] : memref<1x384xf32, #tpu.memory_space<vmem>>, vector<1x384xf32>
    %10 = vector.broadcast %8 : vector<8x1xf32> to vector<8x384xf32>
    %11 = vector.broadcast %9 : vector<1x384xf32> to vector<8x384xf32>
    %12 = arith.mulf %10, %11 : vector<8x384xf32>
    %c0_10 = arith.constant 0 : index
    %c0_11 = arith.constant 0 : index
    %13 = vector.load %arg5[%c0_10, %c0_11] : memref<512x384xf32, #tpu.memory_space<vmem>>, vector<512x384xf32>
    %cst_12 = arith.constant dense<0.000000e+00> : vector<8x384xf32>
    %14 = tpu.matmul %7, %13, %cst_12 {dimension_numbers = #tpu.dot_dimension_numbers<[1], [0], [0], [1], [0, 0, 1, 1], [], []>} : vector<8x512xf32>, vector<512x384xf32>, vector<8x384xf32> -> vector<8x384xf32>
    %15 = arith.addf %14, %12 : vector<8x384xf32>
    %c0_13 = arith.constant 0 : index
    %c0_14 = arith.constant 0 : index
    %16 = vector.load %arg7[%c0_13, %c0_14] : memref<1x384xf32, #tpu.memory_space<vmem>>, vector<1x384xf32>
    %17 = vector.broadcast %16 : vector<1x384xf32> to vector<8x384xf32>
    %18 = arith.addf %15, %17 : vector<8x384xf32>
    %cst_15 = arith.constant 0.000000e+00 : f32
    %19 = vector.broadcast %cst_15 : f32 to vector<8x384xf32>
    %20 = arith.maximumf %18, %19 : vector<8x384xf32>
    %c0_16 = arith.constant 0 : index
    %c0_17 = arith.constant 0 : index
    %21 = vector.load %arg8[%c0_16, %c0_17] : memref<1x384xf32, #tpu.memory_space<vmem>>, vector<1x384xf32>
    %22 = vector.broadcast %21 : vector<1x384xf32> to vector<8x384xf32>
    %23 = arith.mulf %20, %22 : vector<8x384xf32>
    %cst_18 = arith.constant dense<0.000000e+00> : vector<8xf32>
    %24 = vector.multi_reduction <add>, %23, %cst_18 [1] : vector<8x384xf32> to vector<8xf32>
    %25 = vector.shape_cast %24 : vector<8xf32> to vector<8x1xf32>
    %c0_19 = arith.constant 0 : index
    %c0_20 = arith.constant 0 : index
    %26 = vector.load %arg9[%c0_19, %c0_20] : memref<1x1xf32, #tpu.memory_space<vmem>>, vector<1x1xf32>
    %27 = vector.broadcast %26 : vector<1x1xf32> to vector<8x1xf32>
    %28 = arith.addf %25, %27 : vector<8x1xf32>
    %c0_21 = arith.constant 0 : index
    %c0_22 = arith.constant 0 : index
    %29 = vector.load %arg10[%c0_21, %c0_22] : memref<8x1xf32, #tpu.memory_space<vmem>>, vector<8x1xf32>
    tpu.vector_store %arg10[%c0_21, %c0_22], %28 {strides = array<i32>} : memref<8x1xf32, #tpu.memory_space<vmem>>, vector<8x1xf32>,
    return
  }
  func.func @transform_0(%arg0: i32) -> (i32, i32) {
    %c0_i32 = arith.constant 0 : i32
    %c0_i32_0 = arith.constant 0 : i32
    return %arg0, %c0_i32 : i32, i32
  }
  func.func @transform_1(%arg0: i32) -> (i32, i32) {
    %c0_i32 = arith.constant 0 : i32
    %c0_i32_0 = arith.constant 0 : i32
    return %arg0, %c0_i32 : i32, i32
  }
  func.func @transform_2(%arg0: i32) -> (i32, i32) {
    %c0_i32 = arith.constant 0 : i32
    %c0_i32_0 = arith.constant 0 : i32
    %c0_i32_1 = arith.constant 0 : i32
    return %c0_i32, %c0_i32_0 : i32, i32
  }
  func.func @transform_3(%arg0: i32) -> (i32, i32) {
    %c0_i32 = arith.constant 0 : i32
    %c0_i32_0 = arith.constant 0 : i32
    %c0_i32_1 = arith.constant 0 : i32
    return %c0_i32, %c0_i32_0 : i32, i32
  }
  func.func @transform_4(%arg0: i32) -> (i32, i32) {
    %c0_i32 = arith.constant 0 : i32
    %c0_i32_0 = arith.constant 0 : i32
    %c0_i32_1 = arith.constant 0 : i32
    return %c0_i32, %c0_i32_0 : i32, i32
  }
  func.func @transform_5(%arg0: i32) -> (i32, i32) {
    %c0_i32 = arith.constant 0 : i32
    %c0_i32_0 = arith.constant 0 : i32
    %c0_i32_1 = arith.constant 0 : i32
    return %c0_i32, %c0_i32_0 : i32, i32
  }
  func.func @transform_6(%arg0: i32) -> (i32, i32) {
    %c0_i32 = arith.constant 0 : i32
    %c0_i32_0 = arith.constant 0 : i32
    %c0_i32_1 = arith.constant 0 : i32
    return %c0_i32, %c0_i32_0 : i32, i32
  }
  func.func @transform_7(%arg0: i32) -> (i32, i32) {
    %c0_i32 = arith.constant 0 : i32
    %c0_i32_0 = arith.constant 0 : i32
    %c0_i32_1 = arith.constant 0 : i32
    return %c0_i32, %c0_i32_0 : i32, i32
  }
  func.func @transform_8(%arg0: i32) -> (i32, i32) {
    %c0_i32 = arith.constant 0 : i32
    %c0_i32_0 = arith.constant 0 : i32
    %c0_i32_1 = arith.constant 0 : i32
    return %c0_i32, %c0_i32_0 : i32, i32
  }
  func.func @transform_9(%arg0: i32) -> (i32, i32) {
    %c0_i32 = arith.constant 0 : i32
    %c0_i32_0 = arith.constant 0 : i32
    return %arg0, %c0_i32 : i32, i32
  }
}

</mosaic_0001>

<bundles_post_ra>
// kernel: tpu_custom_call.1
= control target key start
LH: loop header
LB: loop body
LE: loop exit
PB: predicated region body
PF: predicated region fallthrough
CT: control target
= control target key end

     0   :  { %s966_s0 = inlined_call_operand.vmem [shape: f32[8,128], index: 0, kind: input, shape index: {}]   ;;  %s967_s1 = inlined_call_operand.vmem [shape: f32[8,1], index: 1, kind: input, shape index: {}]   ;;  %s968_s2 = inlined_call_operand.hbm [shape: f32[128,512], index: 2, kind: input, shape index: {}]   ;;  %s969_s3 = inlined_call_operand.vmem [shape: f32[1,512], index: 3, kind: input, shape index: {}]   ;;  %s970_s4 = inlined_call_operand.hbm [shape: f32[512,384], index: 4, kind: input, shape index: {}]   ;;  %s971_s5 = inlined_call_operand.vmem [shape: f32[1,384], index: 5, kind: input, shape index: {}]   ;;  %s972_s6 = inlined_call_operand.hbm [shape: f32[1,384], index: 6, kind: input, shape index: {}]   ;;  %s973_s7 = inlined_call_operand.hbm [shape: f32[1,384], index: 7, kind: input, shape index: {}]   ;;  %s974_s8 = inlined_call_operand.<no memory space> [shape: f32[1,1], index: 8, kind: input, shape index: {}]   ;;  %s975_s9 = inlined_call_operand.vmem [shape: f32[8,1], index: 9, kind: output, shape index: {}]  }
   0x1   :  { %v14_v0 = vstv %s974_s8 }
   0x2   :  { %15 = vst [vmem:[#allocation2] sm:$0x1] %v14_v0 }
   0x3   :  { %16 = vsyncpa [#allocation4], 0 }
   0x4   :  { %17 = vsyncpa [#allocation6], 0  ;;  %s42_s13 = sshll.u32 %s970_s4, 4  ;;  %s43_s13 = int_to_ptr.hbm [resolvable:$true] %s42_s13 }
   0x5   :  { %18 = vsyncpa [#allocation9], 0  ;;  %s857_s14 = smov [#allocation5]   ;;  %s27_s18 = sshll.u32 %s968_s2, 4  ;;  %s28_s18 = int_to_ptr.hbm [resolvable:$true] %s27_s18 }
   0x6   :  { %s44_s15 = sshll.u32 %s857_s14, 4  ;;  %s858_s19 = smov 384   ;;  %s45_s15 = int_to_ptr.vmem [resolvable:$true] %s44_s15 }
   0x7   :  { %s859_s20 = smov 24   ;;  %s860_s8 = smov [#allocation3]  }
   0x8   :  { %50 = dma.hbm_to_vmem [thread:$0]  %s43_s13, 24576, %s45_s15, [#allocation6], %s858_s19, %s858_s19, %s859_s20  }
   0x9   :  { %s29_s21 = sshll.u32 %s860_s8, 4  ;;  %s861_s22 = smov 512   ;;  %s30_s21 = int_to_ptr.vmem [resolvable:$true] %s29_s21 }
   0xa   :  { %s862_s23 = smov 32   ;;  %s58_s25 = sshll.u32 %s972_s6, 4  ;;  %s59_s25 = int_to_ptr.hbm [resolvable:$true] %s58_s25 }
   0xb   :  { %35 = dma.hbm_to_vmem [thread:$0]  %s28_s18, 8192, %s30_s21, [#allocation4], %s861_s22, %s861_s22, %s862_s23  }
   0xc   :  { %s863_s26 = smov [#allocation7]   ;;  %s69_s29 = sshll.u32 %s973_s7, 4  ;;  %s70_s29 = int_to_ptr.hbm [resolvable:$true] %s69_s29 }
   0xd   :  { %s60_s27 = sshll.u32 %s863_s26, 4  ;;  %s864_s30 = smov [#allocation8]   ;;  %s61_s27 = int_to_ptr.vmem [resolvable:$true] %s60_s27 }
   0xe   :  { %63 = dma.hbm_to_vmem [thread:$0]  %s59_s25, 48, %s61_s27, [#allocation6]  }
   0xf   :  { %s71_s10 = sshll.u32 %s864_s30, 4  ;;  %s72_s10 = int_to_ptr.vmem [resolvable:$true] %s71_s10 }
  0x10   :  { %74 = dma.hbm_to_vmem [thread:$0]  %s70_s29, 48, %s72_s10, [#allocation9]  }
  0x11   :  { %851 = dma.done.wait [#allocation4], 8192  }
  0x12   :  { %852 = vsyncadd [#allocation4], 4294959104 }
  0x13   :  { %853 = dma.done.wait [#allocation6], 24624  }
  0x14   :  { %854 = vsyncadd [#allocation6], 4294942672 }
  0x15   :  { %855 = dma.done.wait [#allocation9], 48  }
  0x16   :  { %856 = vsyncadd [#allocation9], 4294967248  ;;  %v154_v1 = vld [vmem:[#allocation3 + $0x1e0] sm:$0xff]  ;;  %v155_v2 = vld [vmem:[#allocation3 + $0x1e8] sm:$0xff]  ;;  %vm735_vm0 = vcmask 7168  }
  0x17   :  { %v156_v3 = vld [vmem:[#allocation3 + $0x1f0] sm:$0xff]  ;;  %168 = vmatpush.msra.mxu0 %v154_v1  ;;  %188 = vmatpush.msra.mxu1 %v155_v2  ;;  %v157_v4 = vld [vmem:[#allocation3 + $0x1f8] sm:$0xff]  ;;  %v150_v5 = vld [vmem:[#allocation3 + $0x1c0] sm:$0xff] }
  0x18   :  { %v151_v6 = vld [vmem:[#allocation3 + $0x1c8] sm:$0xff]  ;;  %208 = vmatpush.msra.mxu2 %v156_v3  ;;  %228 = vmatpush.msra.mxu3 %v157_v4  ;;  %v152_v7 = vld [vmem:[#allocation3 + $0x1d0] sm:$0xff]  ;;  %v153_v8 = vld [vmem:[#allocation3 + $0x1d8] sm:$0xff] }
  0x19   :  { %v146_v9 = vld [vmem:[#allocation3 + $0x1a0] sm:$0xff]  ;;  %169 = vmatpush.msra.mxu0 %v150_v5  ;;  %189 = vmatpush.msra.mxu1 %v151_v6  ;;  %v147_v10 = vld [vmem:[#allocation3 + $0x1a8] sm:$0xff]  ;;  %v148_v11 = vld [vmem:[#allocation3 + $0x1b0] sm:$0xff] }
  0x1a   :  { %v149_v12 = vld [vmem:[#allocation3 + $0x1b8] sm:$0xff]  ;;  %209 = vmatpush.msra.mxu2 %v152_v7  ;;  %229 = vmatpush.msra.mxu3 %v153_v8  ;;  %v142_v13 = vld [vmem:[#allocation3 + $0x180] sm:$0xff]  ;;  %v143_v14 = vld [vmem:[#allocation3 + $0x188] sm:$0xff] }
  0x1b   :  { %170 = vmatpush.msra.mxu0 %v146_v9  ;;  %190 = vmatpush.msra.mxu1 %v147_v10  ;;  %v144_v15 = vld [vmem:[#allocation3 + $0x190] sm:$0xff]  ;;  %v145_v16 = vld [vmem:[#allocation3 + $0x198] sm:$0xff]  ;;  %v138_v17 = vld [vmem:[#allocation3 + $0x160] sm:$0xff] }
  0x1c   :  { %210 = vmatpush.msra.mxu2 %v148_v11  ;;  %230 = vmatpush.msra.mxu3 %v149_v12  ;;  %v139_v18 = vld [vmem:[#allocation3 + $0x168] sm:$0xff]  ;;  %v140_v19 = vld [vmem:[#allocation3 + $0x170] sm:$0xff]  ;;  %v141_v20 = vld [vmem:[#allocation3 + $0x178] sm:$0xff] }
  0x1d   :  { %171 = vmatpush.msra.mxu0 %v142_v13  ;;  %191 = vmatpush.msra.mxu1 %v143_v14  ;;  %v134_v21 = vld [vmem:[#allocation3 + $0x140] sm:$0xff]  ;;  %v135_v22 = vld [vmem:[#allocation3 + $0x148] sm:$0xff]  ;;  %v136_v23 = vld [vmem:[#allocation3 + $0x150] sm:$0xff] }
  0x1e   :  { %211 = vmatpush.msra.mxu2 %v144_v15  ;;  %231 = vmatpush.msra.mxu3 %v145_v16  ;;  %v137_v24 = vld [vmem:[#allocation3 + $0x158] sm:$0xff]  ;;  %v130_v25 = vld [vmem:[#allocation3 + $0x120] sm:$0xff]  ;;  %v131_v26 = vld [vmem:[#allocation3 + $0x128] sm:$0xff] }
  0x1f   :  { %172 = vmatpush.msra.mxu0 %v138_v17  ;;  %192 = vmatpush.msra.mxu1 %v139_v18  ;;  %v132_v27 = vld [vmem:[#allocation3 + $0x130] sm:$0xff]  ;;  %v133_v28 = vld [vmem:[#allocation3 + $0x138] sm:$0xff]  ;;  %v126_v29 = vld [vmem:[#allocation3 + $0x100] sm:$0xff] }
  0x20   :  { %212 = vmatpush.msra.mxu2 %v140_v19  ;;  %232 = vmatpush.msra.mxu3 %v141_v20  ;;  %v127_v30 = vld [vmem:[#allocation3 + $0x108] sm:$0xff]  ;;  %v128_v31 = vld [vmem:[#allocation3 + $0x110] sm:$0xff]  ;;  %v129_v32 = vld [vmem:[#allocation3 + $0x118] sm:$0xff] }
  0x21   :  { %173 = vmatpush.msra.mxu0 %v134_v21  ;;  %193 = vmatpush.msra.mxu1 %v135_v22  ;;  %v122_v33 = vld [vmem:[#allocation3 + $0xe0] sm:$0xff]  ;;  %v123_v34 = vld [vmem:[#allocation3 + $0xe8] sm:$0xff]  ;;  %v124_v35 = vld [vmem:[#allocation3 + $0xf0] sm:$0xff] }
  0x22   :  { %213 = vmatpush.msra.mxu2 %v136_v23  ;;  %233 = vmatpush.msra.mxu3 %v137_v24  ;;  %v125_v36 = vld [vmem:[#allocation3 + $0xf8] sm:$0xff]  ;;  %v118_v37 = vld [vmem:[#allocation3 + $0xc0] sm:$0xff]  ;;  %v119_v38 = vld [vmem:[#allocation3 + $0xc8] sm:$0xff] }
  0x23   :  { %174 = vmatpush.msra.mxu0 %v130_v25  ;;  %194 = vmatpush.msra.mxu1 %v131_v26  ;;  %v120_v39 = vld [vmem:[#allocation3 + $0xd0] sm:$0xff]  ;;  %v121_v40 = vld [vmem:[#allocation3 + $0xd8] sm:$0xff]  ;;  %v114_v41 = vld [vmem:[#allocation3 + $0xa0] sm:$0xff] }
  0x24   :  { %214 = vmatpush.msra.mxu2 %v132_v27  ;;  %234 = vmatpush.msra.mxu3 %v133_v28  ;;  %v115_v42 = vld [vmem:[#allocation3 + $0xa8] sm:$0xff]  ;;  %v116_v43 = vld [vmem:[#allocation3 + $0xb0] sm:$0xff]  ;;  %v117_v44 = vld [vmem:[#allocation3 + $0xb8] sm:$0xff] }
  0x25   :  { %175 = vmatpush.msra.mxu0 %v126_v29  ;;  %195 = vmatpush.msra.mxu1 %v127_v30  ;;  %v110_v45 = vld [vmem:[#allocation3 + $0x80] sm:$0xff]  ;;  %v111_v46 = vld [vmem:[#allocation3 + $0x88] sm:$0xff]  ;;  %v112_v47 = vld [vmem:[#allocation3 + $0x90] sm:$0xff] }
  0x26   :  { %215 = vmatpush.msra.mxu2 %v128_v31  ;;  %235 = vmatpush.msra.mxu3 %v129_v32  ;;  %v113_v48 = vld [vmem:[#allocation3 + $0x98] sm:$0xff]  ;;  %v106_v49 = vld [vmem:[#allocation3 + $0x60] sm:$0xff]  ;;  %v107_v50 = vld [vmem:[#allocation3 + $0x68] sm:$0xff] }
  0x27   :  { %176 = vmatpush.msra.mxu0 %v122_v33  ;;  %196 = vmatpush.msra.mxu1 %v123_v34  ;;  %v108_v51 = vld [vmem:[#allocation3 + $0x70] sm:$0xff]  ;;  %v109_v52 = vld [vmem:[#allocation3 + $0x78] sm:$0xff]  ;;  %v102_v53 = vld [vmem:[#allocation3 + $0x40] sm:$0xff] }
  0x28   :  { %216 = vmatpush.msra.mxu2 %v124_v35  ;;  %236 = vmatpush.msra.mxu3 %v125_v36  ;;  %v103_v54 = vld [vmem:[#allocation3 + $0x48] sm:$0xff]  ;;  %v104_v55 = vld [vmem:[#allocation3 + $0x50] sm:$0xff]  ;;  %v105_v56 = vld [vmem:[#allocation3 + $0x58] sm:$0xff] }
  0x29   :  { %177 = vmatpush.msra.mxu0 %v118_v37  ;;  %197 = vmatpush.msra.mxu1 %v119_v38  ;;  %v98_v57 = vld [vmem:[#allocation3 + $0x20] sm:$0xff]  ;;  %v99_v58 = vld [vmem:[#allocation3 + $0x28] sm:$0xff]  ;;  %v100_v59 = vld [vmem:[#allocation3 + $0x30] sm:$0xff] }
  0x2a   :  { %217 = vmatpush.msra.mxu2 %v120_v39  ;;  %237 = vmatpush.msra.mxu3 %v121_v40  ;;  %v101_v60 = vld [vmem:[#allocation3 + $0x38] sm:$0xff]  ;;  %v94_v61 = vld [vmem:[#allocation3] sm:$0xff]  ;;  %v95_v62 = vld [vmem:[#allocation3 + $0x8] sm:$0xff] }
  0x2b   :  { %178 = vmatpush.msra.mxu0 %v114_v41  ;;  %198 = vmatpush.msra.mxu1 %v115_v42  ;;  %v96_v63 = vld [vmem:[#allocation3 + $0x10] sm:$0xff]  ;;  %v97_v0 = vld [vmem:[#allocation3 + $0x18] sm:$0xff]  ;;  %v314_v2 = vld [vmem:[#allocation5 + $0x168] sm:$0xff] }
  0x2c   :  { %218 = vmatpush.msra.mxu2 %v116_v43  ;;  %238 = vmatpush.msra.mxu3 %v117_v44  ;;  %v93_v1 = vld [vmem:[%s966_s0] sm:$0xff]  ;;  %v362_v3 = vld [vmem:[#allocation5 + $0x2e8] sm:$0xff]  ;;  %v311_v6 = vld [vmem:[#allocation5 + $0x150] sm:$0xff] }
  0x2d   :  { %179 = vmatpush.msra.mxu0 %v110_v45  ;;  %199 = vmatpush.msra.mxu1 %v111_v46  ;;  %v410_v4 = vld [vmem:[#allocation5 + $0x468] sm:$0xff]  ;;  %v359_v7 = vld [vmem:[#allocation5 + $0x2d0] sm:$0xff]  ;;  %v308_v10 = vld [vmem:[#allocation5 + $0x138] sm:$0xff] }
  0x2e   :  { %219 = vmatpush.msra.mxu2 %v112_v47  ;;  %239 = vmatpush.msra.mxu3 %v113_v48  ;;  %v458_v5 = vld [vmem:[#allocation5 + $0x5e8] sm:$0xff]  ;;  %v407_v8 = vld [vmem:[#allocation5 + $0x450] sm:$0xff]  ;;  %v356_v11 = vld [vmem:[#allocation5 + $0x2b8] sm:$0xff] }
  0x2f   :  { %180 = vmatpush.msra.mxu0 %v106_v49  ;;  %200 = vmatpush.msra.mxu1 %v107_v50  ;;  %v455_v9 = vld [vmem:[#allocation5 + $0x5d0] sm:$0xff]  ;;  %v404_v12 = vld [vmem:[#allocation5 + $0x438] sm:$0xff]  ;;  %v305_v14 = vld [vmem:[#allocation5 + $0x120] sm:$0xff] }
  0x30   :  { %220 = vmatpush.msra.mxu2 %v108_v51  ;;  %240 = vmatpush.msra.mxu3 %v109_v52  ;;  %v452_v13 = vld [vmem:[#allocation5 + $0x5b8] sm:$0xff]  ;;  %v353_v15 = vld [vmem:[#allocation5 + $0x2a0] sm:$0xff]  ;;  %v302_v18 = vld [vmem:[#allocation5 + $0x108] sm:$0xff] }
  0x31   :  { %181 = vmatpush.msra.mxu0 %v102_v53  ;;  %201 = vmatpush.msra.mxu1 %v103_v54  ;;  %v401_v16 = vld [vmem:[#allocation5 + $0x420] sm:$0xff]  ;;  %v350_v19 = vld [vmem:[#allocation5 + $0x288] sm:$0xff]  ;;  %v299_v22 = vld [vmem:[#allocation5 + $0xf0] sm:$0xff] }
  0x32   :  { %221 = vmatpush.msra.mxu2 %v104_v55  ;;  %241 = vmatpush.msra.mxu3 %v105_v56  ;;  %v449_v17 = vld [vmem:[#allocation5 + $0x5a0] sm:$0xff]  ;;  %v398_v20 = vld [vmem:[#allocation5 + $0x408] sm:$0xff]  ;;  %v347_v23 = vld [vmem:[#allocation5 + $0x270] sm:$0xff] }
  0x33   :  { %182 = vmatpush.msra.mxu0 %v98_v57  ;;  %202 = vmatpush.msra.mxu1 %v99_v58  ;;  %v446_v21 = vld [vmem:[#allocation5 + $0x588] sm:$0xff]  ;;  %v395_v24 = vld [vmem:[#allocation5 + $0x3f0] sm:$0xff]  ;;  %v296_v26 = vld [vmem:[#allocation5 + $0xd8] sm:$0xff] }
  0x34   :  { %222 = vmatpush.msra.mxu2 %v100_v59  ;;  %242 = vmatpush.msra.mxu3 %v101_v60  ;;  %v443_v25 = vld [vmem:[#allocation5 + $0x570] sm:$0xff]  ;;  %v344_v27 = vld [vmem:[#allocation5 + $0x258] sm:$0xff]  ;;  %v293_v30 = vld [vmem:[#allocation5 + $0xc0] sm:$0xff] }
  0x35   :  { %183 = vmatpush.msra.mxu0 %v94_v61  ;;  %203 = vmatpush.msra.mxu1 %v95_v62  ;;  %v392_v28 = vld [vmem:[#allocation5 + $0x3d8] sm:$0xff]  ;;  %v341_v31 = vld [vmem:[#allocation5 + $0x240] sm:$0xff]  ;;  %v290_v34 = vld [vmem:[#allocation5 + $0xa8] sm:$0xff] }
  0x36   :  { %223 = vmatpush.msra.mxu2 %v96_v63  ;;  %243 = vmatpush.msra.mxu3 %v97_v0  ;;  %v440_v29 = vld [vmem:[#allocation5 + $0x558] sm:$0xff]  ;;  %v389_v32 = vld [vmem:[#allocation5 + $0x3c0] sm:$0xff]  ;;  %v338_v35 = vld [vmem:[#allocation5 + $0x228] sm:$0xff] }
  0x37   :  { %184 = vmatmul.f32.vlgmr.msra.gmra.mxu0 %v93_v1  ;;  %204 = vmatmul.f32.vlgmr.msra.gmra.mxu1 %v93_v1  ;;  %v437_v33 = vld [vmem:[#allocation5 + $0x540] sm:$0xff]  ;;  %v386_v36 = vld [vmem:[#allocation5 + $0x3a8] sm:$0xff]  ;;  %v287_v38 = vld [vmem:[#allocation5 + $0x90] sm:$0xff] }
  0x38   :  { %224 = vmatmul.f32.vlgmr.msra.gmra.mxu2 %v93_v1  ;;  %244 = vmatmul.f32.vlgmr.msra.gmra.mxu3 %v93_v1  ;;  %v434_v37 = vld [vmem:[#allocation5 + $0x528] sm:$0xff]  ;;  %v335_v39 = vld [vmem:[#allocation5 + $0x210] sm:$0xff]  ;;  %v284_v42 = vld [vmem:[#allocation5 + $0x78] sm:$0xff] }
  0x39   :  { %461 = vmatpush.msrb.mxu0 %v314_v2  ;;  %481 = vmatpush.msrb.mxu1 %v362_v3  ;;  %v383_v40 = vld [vmem:[#allocation5 + $0x390] sm:$0xff]  ;;  %v332_v43 = vld [vmem:[#allocation5 + $0x1f8] sm:$0xff]  ;;  %v281_v46 = vld [vmem:[#allocation5 + $0x60] sm:$0xff] }
  0x3a   :  { %501 = vmatpush.msrb.mxu2 %v410_v4  ;;  %521 = vmatpush.msrb.mxu3 %v458_v5  ;;  %v431_v41 = vld [vmem:[#allocation5 + $0x510] sm:$0xff]  ;;  %v380_v44 = vld [vmem:[#allocation5 + $0x378] sm:$0xff]  ;;  %v329_v47 = vld [vmem:[#allocation5 + $0x1e0] sm:$0xff] }
  0x3b   :  { %462 = vmatpush.msrb.mxu0 %v311_v6  ;;  %482 = vmatpush.msrb.mxu1 %v359_v7  ;;  %v428_v45 = vld [vmem:[#allocation5 + $0x4f8] sm:$0xff]  ;;  %v377_v48 = vld [vmem:[#allocation5 + $0x360] sm:$0xff]  ;;  %v278_v50 = vld [vmem:[#allocation5 + $0x48] sm:$0xff] }
  0x3c   :  { %502 = vmatpush.msrb.mxu2 %v407_v8  ;;  %522 = vmatpush.msrb.mxu3 %v455_v9  ;;  %v425_v49 = vld [vmem:[#allocation5 + $0x4e0] sm:$0xff]  ;;  %v326_v51 = vld [vmem:[#allocation5 + $0x1c8] sm:$0xff]  ;;  %v275_v54 = vld [vmem:[#allocation5 + $0x30] sm:$0xff] }
  0x3d   :  { %463 = vmatpush.msrb.mxu0 %v308_v10  ;;  %483 = vmatpush.msrb.mxu1 %v356_v11  ;;  %v374_v52 = vld [vmem:[#allocation5 + $0x348] sm:$0xff]  ;;  %v323_v55 = vld [vmem:[#allocation5 + $0x1b0] sm:$0xff]  ;;  %v272_v58 = vld [vmem:[#allocation5 + $0x18] sm:$0xff] }
  0x3e   :  { %503 = vmatpush.msrb.mxu2 %v404_v12  ;;  %523 = vmatpush.msrb.mxu3 %v452_v13  ;;  %v422_v53 = vld [vmem:[#allocation5 + $0x4c8] sm:$0xff]  ;;  %v371_v56 = vld [vmem:[#allocation5 + $0x330] sm:$0xff]  ;;  %v320_v59 = vld [vmem:[#allocation5 + $0x198] sm:$0xff] }
  0x3f   :  { %464 = vmatpush.msrb.mxu0 %v305_v14  ;;  %484 = vmatpush.msrb.mxu1 %v353_v15  ;;  %v419_v57 = vld [vmem:[#allocation5 + $0x4b0] sm:$0xff]  ;;  %v368_v60 = vld [vmem:[#allocation5 + $0x318] sm:$0xff]  ;;  %v269_v62 = vld [vmem:[#allocation5] sm:$0xff] }
  0x40   :  { %504 = vmatpush.msrb.mxu2 %v401_v16  ;;  %524 = vmatpush.msrb.mxu3 %v449_v17  ;;  %v416_v61 = vld [vmem:[#allocation5 + $0x498] sm:$0xff]  ;;  %v317_v63 = vld [vmem:[#allocation5 + $0x180] sm:$0xff]  ;;  %v315_v0 = vld [vmem:[#allocation5 + $0x170] sm:$0xff] }
  0x41   :  { %465 = vmatpush.msrb.mxu0 %v302_v18  ;;  %485 = vmatpush.msrb.mxu1 %v350_v19  ;;  %v363_v1 = vld [vmem:[#allocation5 + $0x2f0] sm:$0xff]  ;;  %v365_v2 = vld [vmem:[#allocation5 + $0x300] sm:$0xff]  ;;  %v312_v4 = vld [vmem:[#allocation5 + $0x158] sm:$0xff] }
  0x42   :  { %505 = vmatpush.msrb.mxu2 %v398_v20  ;;  %525 = vmatpush.msrb.mxu3 %v446_v21  ;;  %v413_v3 = vld [vmem:[#allocation5 + $0x480] sm:$0xff]  ;;  %v360_v5 = vld [vmem:[#allocation5 + $0x2d8] sm:$0xff]  ;;  %v411_v6 = vld [vmem:[#allocation5 + $0x470] sm:$0xff] }
  0x43   :  { %466 = vmatpush.msrb.mxu0 %v299_v22  ;;  %486 = vmatpush.msrb.mxu1 %v347_v23  ;;  %v459_v7 = vld [vmem:[#allocation5 + $0x5f0] sm:$0xff]  ;;  %v309_v8 = vld [vmem:[#allocation5 + $0x140] sm:$0xff]  ;;  %v408_v10 = vld [vmem:[#allocation5 + $0x458] sm:$0xff] }
  0x44   :  { %506 = vmatpush.msrb.mxu2 %v395_v24  ;;  %526 = vmatpush.msrb.mxu3 %v443_v25  ;;  %v357_v9 = vld [vmem:[#allocation5 + $0x2c0] sm:$0xff]  ;;  %v456_v11 = vld [vmem:[#allocation5 + $0x5d8] sm:$0xff]  ;;  %v306_v12 = vld [vmem:[#allocation5 + $0x128] sm:$0xff] }
  0x45   :  { %467 = vmatpush.msrb.mxu0 %v296_v26  ;;  %487 = vmatpush.msrb.mxu1 %v344_v27  ;;  %v354_v13 = vld [vmem:[#allocation5 + $0x2a8] sm:$0xff]  ;;  %v405_v14 = vld [vmem:[#allocation5 + $0x440] sm:$0xff]  ;;  %v303_v16 = vld [vmem:[#allocation5 + $0x110] sm:$0xff] }
  0x46   :  { %507 = vmatpush.msrb.mxu2 %v392_v28  ;;  %527 = vmatpush.msrb.mxu3 %v440_v29  ;;  %v453_v15 = vld [vmem:[#allocation5 + $0x5c0] sm:$0xff]  ;;  %v351_v17 = vld [vmem:[#allocation5 + $0x290] sm:$0xff]  ;;  %v402_v18 = vld [vmem:[#allocation5 + $0x428] sm:$0xff] }
  0x47   :  { %468 = vmatpush.msrb.mxu0 %v293_v30  ;;  %488 = vmatpush.msrb.mxu1 %v341_v31  ;;  %v450_v19 = vld [vmem:[#allocation5 + $0x5a8] sm:$0xff]  ;;  %v300_v20 = vld [vmem:[#allocation5 + $0xf8] sm:$0xff]  ;;  %v399_v22 = vld [vmem:[#allocation5 + $0x410] sm:$0xff] }
  0x48   :  { %508 = vmatpush.msrb.mxu2 %v389_v32  ;;  %528 = vmatpush.msrb.mxu3 %v437_v33  ;;  %v348_v21 = vld [vmem:[#allocation5 + $0x278] sm:$0xff]  ;;  %v447_v23 = vld [vmem:[#allocation5 + $0x590] sm:$0xff]  ;;  %v297_v24 = vld [vmem:[#allocation5 + $0xe0] sm:$0xff] }
  0x49   :  { %469 = vmatpush.msrb.mxu0 %v290_v34  ;;  %489 = vmatpush.msrb.mxu1 %v338_v35  ;;  %v345_v25 = vld [vmem:[#allocation5 + $0x260] sm:$0xff]  ;;  %v396_v26 = vld [vmem:[#allocation5 + $0x3f8] sm:$0xff]  ;;  %v294_v28 = vld [vmem:[#allocation5 + $0xc8] sm:$0xff] }
  0x4a   :  { %509 = vmatpush.msrb.mxu2 %v386_v36  ;;  %529 = vmatpush.msrb.mxu3 %v434_v37  ;;  %v444_v27 = vld [vmem:[#allocation5 + $0x578] sm:$0xff]  ;;  %v342_v29 = vld [vmem:[#allocation5 + $0x248] sm:$0xff]  ;;  %v393_v30 = vld [vmem:[#allocation5 + $0x3e0] sm:$0xff] }
  0x4b   :  { %470 = vmatpush.msrb.mxu0 %v287_v38  ;;  %490 = vmatpush.msrb.mxu1 %v335_v39  ;;  %v441_v31 = vld [vmem:[#allocation5 + $0x560] sm:$0xff]  ;;  %v291_v32 = vld [vmem:[#allocation5 + $0xb0] sm:$0xff]  ;;  %v390_v34 = vld [vmem:[#allocation5 + $0x3c8] sm:$0xff] }
  0x4c   :  { %510 = vmatpush.msrb.mxu2 %v383_v40  ;;  %530 = vmatpush.msrb.mxu3 %v431_v41  ;;  %v339_v33 = vld [vmem:[#allocation5 + $0x230] sm:$0xff]  ;;  %v438_v35 = vld [vmem:[#allocation5 + $0x548] sm:$0xff]  ;;  %v288_v36 = vld [vmem:[#allocation5 + $0x98] sm:$0xff] }
  0x4d   :  { %471 = vmatpush.msrb.mxu0 %v284_v42  ;;  %491 = vmatpush.msrb.mxu1 %v332_v43  ;;  %v336_v37 = vld [vmem:[#allocation5 + $0x218] sm:$0xff]  ;;  %v387_v38 = vld [vmem:[#allocation5 + $0x3b0] sm:$0xff]  ;;  %v285_v40 = vld [vmem:[#allocation5 + $0x80] sm:$0xff] }
  0x4e   :  { %511 = vmatpush.msrb.mxu2 %v380_v44  ;;  %531 = vmatpush.msrb.mxu3 %v428_v45  ;;  %v435_v39 = vld [vmem:[#allocation5 + $0x530] sm:$0xff]  ;;  %v333_v41 = vld [vmem:[#allocation5 + $0x200] sm:$0xff]  ;;  %v384_v42 = vld [vmem:[#allocation5 + $0x398] sm:$0xff] }
  0x4f   :  { %472 = vmatpush.msrb.mxu0 %v281_v46  ;;  %492 = vmatpush.msrb.mxu1 %v329_v47  ;;  %v432_v43 = vld [vmem:[#allocation5 + $0x518] sm:$0xff]  ;;  %v282_v44 = vld [vmem:[#allocation5 + $0x68] sm:$0xff]  ;;  %v279_v46 = vld [vmem:[#allocation5 + $0x50] sm:$0xff] }
  0x50   :  { %512 = vmatpush.msrb.mxu2 %v377_v48  ;;  %532 = vmatpush.msrb.mxu3 %v425_v49  ;;  %v330_v45 = vld [vmem:[#allocation5 + $0x1e8] sm:$0xff]  ;;  %v327_v47 = vld [vmem:[#allocation5 + $0x1d0] sm:$0xff]  ;;  %v276_v48 = vld [vmem:[#allocation5 + $0x38] sm:$0xff] }
  0x51   :  { %473 = vmatpush.msrb.mxu0 %v278_v50  ;;  %493 = vmatpush.msrb.mxu1 %v326_v51  ;;  %v324_v49 = vld [vmem:[#allocation5 + $0x1b8] sm:$0xff]  ;;  %v381_v50 = vld [vmem:[#allocation5 + $0x380] sm:$0xff] }
  0x52   :  { %513 = vmatpush.msrb.mxu2 %v374_v52  ;;  %533 = vmatpush.msrb.mxu3 %v422_v53  ;;  %v429_v51 = vld [vmem:[#allocation5 + $0x500] sm:$0xff] }
  0x53   :  { %474 = vmatpush.msrb.mxu0 %v275_v54  ;;  %494 = vmatpush.msrb.mxu1 %v323_v55  ;;  %v273_v52 = vld [vmem:[#allocation5 + $0x20] sm:$0xff]  ;;  %v378_v54 = vld [vmem:[#allocation5 + $0x368] sm:$0xff] }
  0x54   :  { %514 = vmatpush.msrb.mxu2 %v371_v56  ;;  %534 = vmatpush.msrb.mxu3 %v419_v57  ;;  %v321_v53 = vld [vmem:[#allocation5 + $0x1a0] sm:$0xff]  ;;  %v426_v55 = vld [vmem:[#allocation5 + $0x4e8] sm:$0xff] }
  0x55   :  { %475 = vmatpush.msrb.mxu0 %v272_v58  ;;  %495 = vmatpush.msrb.mxu1 %v320_v59  ;;  %v270_v56 = vld [vmem:[#allocation5 + $0x8] sm:$0xff]  ;;  %v375_v58 = vld [vmem:[#allocation5 + $0x350] sm:$0xff] }
  0x56   :  { %515 = vmatpush.msrb.mxu2 %v368_v60  ;;  %535 = vmatpush.msrb.mxu3 %v416_v61  ;;  %v318_v57 = vld [vmem:[#allocation5 + $0x188] sm:$0xff]  ;;  %v423_v59 = vld [vmem:[#allocation5 + $0x4d0] sm:$0xff]  ;;  %v372_v60 = vld [vmem:[#allocation5 + $0x338] sm:$0xff] }
  0x57   :  { %476 = vmatpush.msrb.mxu0 %v269_v62  ;;  %496 = vmatpush.msrb.mxu1 %v317_v63  ;;  %v420_v61 = vld [vmem:[#allocation5 + $0x4b8] sm:$0xff]  ;;  %v369_v62 = vld [vmem:[#allocation5 + $0x320] sm:$0xff] }
  0x58   :  { %516 = vmatpush.msrb.mxu2 %v365_v2  ;;  %536 = vmatpush.msrb.mxu3 %v413_v3  ;;  %v417_v63 = vld [vmem:[#allocation5 + $0x4a0] sm:$0xff]  ;;  %v865_v2 = vmov 0  }
  0x59   :  { %541 = vmatpush.msra.mxu0 %v315_v0  ;;  %561 = vmatpush.msra.mxu1 %v363_v1  ;;  %v366_v0 = vld [vmem:[#allocation5 + $0x308] sm:$0xff]  ;;  %v158_v3 = vld [vmem:[%s969_s3] sm:$0xf] }
  0x5a   :  { %581 = vmatpush.msra.mxu2 %v411_v6  ;;  %601 = vmatpush.msra.mxu3 %v459_v7  ;;  %v414_v1 = vld [vmem:[#allocation5 + $0x488] sm:$0xff]  ;;  %v161_v6 = vperm.slane %v158_v3, 1 }
  0x5b   :  { %542 = vmatpush.msra.mxu0 %v312_v4  ;;  %562 = vmatpush.msra.mxu1 %v360_v5  ;;  %v252_v4 = vld [vmem:[%s967_s1] sm:$0xff]  ;;  %v160_v5 = vperm.slane %v158_v3, 0 }
  0x5c   :  { %582 = vmatpush.msra.mxu2 %v408_v10  ;;  %602 = vmatpush.msra.mxu3 %v456_v11 }
  0x5d   :  { %543 = vmatpush.msra.mxu0 %v309_v8  ;;  %563 = vmatpush.msra.mxu1 %v357_v9 }
  0x5e   :  { %583 = vmatpush.msra.mxu2 %v405_v14  ;;  %603 = vmatpush.msra.mxu3 %v453_v15  ;;  %v364_v14 = vld [vmem:[#allocation5 + $0x2f8] sm:$0xff]  ;;  %v162_v15 = vperm.slane %v158_v3, 2 }
  0x5f   :  { %544 = vmatpush.msra.mxu0 %v306_v12  ;;  %564 = vmatpush.msra.mxu1 %v354_v13  ;;  %v316_v13 = vld [vmem:[#allocation5 + $0x178] sm:$0xff] }
  0x60   :  { %584 = vmatpush.msra.mxu2 %v402_v18  ;;  %604 = vmatpush.msra.mxu3 %v450_v19  ;;  %v361_v18 = vld [vmem:[#allocation5 + $0x2e0] sm:$0xff] }
  0x61   :  { %545 = vmatpush.msra.mxu0 %v303_v16  ;;  %565 = vmatpush.msra.mxu1 %v351_v17  ;;  %v163_v16 = vperm.slane %v158_v3, 3  ;;  %v313_v17 = vld [vmem:[#allocation5 + $0x160] sm:$0xff] }
  0x62   :  { %585 = vmatpush.msra.mxu2 %v399_v22  ;;  %605 = vmatpush.msra.mxu3 %v447_v23  ;;  %v358_v22 = vld [vmem:[#allocation5 + $0x2c8] sm:$0xff]  ;;  %v277_v3 = vld [vmem:[#allocation5 + $0x40] sm:$0xff] }
  0x63   :  { %546 = vmatpush.msra.mxu0 %v300_v20  ;;  %566 = vmatpush.msra.mxu1 %v348_v21  ;;  %v310_v21 = vld [vmem:[#allocation5 + $0x148] sm:$0xff] }
  0x64   :  { %586 = vmatpush.msra.mxu2 %v396_v26  ;;  %606 = vmatpush.msra.mxu3 %v444_v27  ;;  %v307_v27 = vld [vmem:[#allocation5 + $0x130] sm:$0xff] }
  0x65   :  { %547 = vmatpush.msra.mxu0 %v297_v24  ;;  %567 = vmatpush.msra.mxu1 %v345_v25 }
  0x66   :  { %587 = vmatpush.msra.mxu2 %v393_v30  ;;  %607 = vmatpush.msra.mxu3 %v441_v31  ;;  %v460_v30 = vld [vmem:[#allocation5 + $0x5f8] sm:$0xff] }
  0x67   :  { %548 = vmatpush.msra.mxu0 %v294_v28  ;;  %568 = vmatpush.msra.mxu1 %v342_v29  ;;  %v355_v28 = vld [vmem:[#allocation5 + $0x2b0] sm:$0xff]  ;;  %v412_v29 = vld [vmem:[#allocation5 + $0x478] sm:$0xff] }
  0x68   :  { %588 = vmatpush.msra.mxu2 %v390_v34  ;;  %608 = vmatpush.msra.mxu3 %v438_v35  ;;  %v352_v31 = vld [vmem:[#allocation5 + $0x298] sm:$0xff]  ;;  %v457_v34 = vld [vmem:[#allocation5 + $0x5e0] sm:$0xff] }
  0x69   :  { %549 = vmatpush.msra.mxu0 %v291_v32  ;;  %569 = vmatpush.msra.mxu1 %v339_v33  ;;  %v304_v32 = vld [vmem:[#allocation5 + $0x118] sm:$0xff]  ;;  %v409_v33 = vld [vmem:[#allocation5 + $0x460] sm:$0xff] }
  0x6a   :  { %589 = vmatpush.msra.mxu2 %v387_v38  ;;  %609 = vmatpush.msra.mxu3 %v435_v39  ;;  %v301_v35 = vld [vmem:[#allocation5 + $0x100] sm:$0xff]  ;;  %v454_v38 = vld [vmem:[#allocation5 + $0x5c8] sm:$0xff] }
  0x6b   :  { %550 = vmatpush.msra.mxu0 %v288_v36  ;;  %570 = vmatpush.msra.mxu1 %v336_v37  ;;  %v349_v36 = vld [vmem:[#allocation5 + $0x280] sm:$0xff]  ;;  %v406_v37 = vld [vmem:[#allocation5 + $0x448] sm:$0xff] }
  0x6c   :  { %590 = vmatpush.msra.mxu2 %v384_v42  ;;  %610 = vmatpush.msra.mxu3 %v432_v43  ;;  %v298_v39 = vld [vmem:[#allocation5 + $0xe8] sm:$0xff]  ;;  %v451_v42 = vld [vmem:[#allocation5 + $0x5b0] sm:$0xff] }
  0x6d   :  { %551 = vmatpush.msra.mxu0 %v285_v40  ;;  %571 = vmatpush.msra.mxu1 %v333_v41  ;;  %v346_v40 = vld [vmem:[#allocation5 + $0x268] sm:$0xff]  ;;  %v403_v41 = vld [vmem:[#allocation5 + $0x430] sm:$0xff] }
  0x6e   :  { %591 = vmatpush.msra.mxu2 %v381_v50  ;;  %611 = vmatpush.msra.mxu3 %v429_v51  ;;  %v295_v43 = vld [vmem:[#allocation5 + $0xd0] sm:$0xff]  ;;  %v445_v50 = vld [vmem:[#allocation5 + $0x580] sm:$0xff] }
  0x6f   :  { %552 = vmatpush.msra.mxu0 %v282_v44  ;;  %572 = vmatpush.msra.mxu1 %v330_v45  ;;  %v343_v44 = vld [vmem:[#allocation5 + $0x250] sm:$0xff]  ;;  %v400_v45 = vld [vmem:[#allocation5 + $0x418] sm:$0xff]  ;;  %v289_v51 = vld [vmem:[#allocation5 + $0xa0] sm:$0xff] }
  0x70   :  { %592 = vmatpush.msra.mxu2 %v378_v54  ;;  %612 = vmatpush.msra.mxu3 %v426_v55  ;;  %v442_v54 = vld [vmem:[#allocation5 + $0x568] sm:$0xff] }
  0x71   :  { %553 = vmatpush.msra.mxu0 %v279_v46  ;;  %573 = vmatpush.msra.mxu1 %v327_v47  ;;  %v448_v46 = vld [vmem:[#allocation5 + $0x598] sm:$0xff]  ;;  %v286_v55 = vld [vmem:[#allocation5 + $0x88] sm:$0xff] }
  0x72   :  { %593 = vmatpush.msra.mxu2 %v375_v58  ;;  %613 = vmatpush.msra.mxu3 %v423_v59  ;;  %v292_v47 = vld [vmem:[#allocation5 + $0xb8] sm:$0xff]  ;;  %v439_v58 = vld [vmem:[#allocation5 + $0x550] sm:$0xff] }
  0x73   :  { %554 = vmatpush.msra.mxu0 %v276_v48  ;;  %574 = vmatpush.msra.mxu1 %v324_v49  ;;  %v340_v48 = vld [vmem:[#allocation5 + $0x238] sm:$0xff]  ;;  %v397_v49 = vld [vmem:[#allocation5 + $0x400] sm:$0xff]  ;;  %v283_v59 = vld [vmem:[#allocation5 + $0x70] sm:$0xff] }
  0x74   :  { %594 = vmatpush.msra.mxu2 %v372_v60  ;;  %614 = vmatpush.msra.mxu3 %v420_v61  ;;  %v331_v60 = vld [vmem:[#allocation5 + $0x1f0] sm:$0xff]  ;;  %v388_v61 = vld [vmem:[#allocation5 + $0x3b8] sm:$0xff] }
  0x75   :  { %555 = vmatpush.msra.mxu0 %v273_v52  ;;  %575 = vmatpush.msra.mxu1 %v321_v53  ;;  %v337_v52 = vld [vmem:[#allocation5 + $0x220] sm:$0xff]  ;;  %v394_v53 = vld [vmem:[#allocation5 + $0x3e8] sm:$0xff] }
  0x76   :  { %595 = vmatpush.msra.mxu2 %v369_v62  ;;  %615 = vmatpush.msra.mxu3 %v417_v63  ;;  %v436_v62 = vld [vmem:[#allocation5 + $0x538] sm:$0xff] }
  0x77   :  { %556 = vmatpush.msra.mxu0 %v270_v56  ;;  %576 = vmatpush.msra.mxu1 %v318_v57  ;;  %v334_v56 = vld [vmem:[#allocation5 + $0x208] sm:$0xff]  ;;  %v391_v57 = vld [vmem:[#allocation5 + $0x3d0] sm:$0xff]  ;;  %v280_v63 = vld [vmem:[#allocation5 + $0x58] sm:$0xff] }
  0x78   :  { %596 = vmatpush.msra.mxu2 %v366_v0  ;;  %616 = vmatpush.msra.mxu3 %v414_v1  ;;  %v328_v0 = vld [vmem:[#allocation5 + $0x1d8] sm:$0xff]  ;;  %v385_v1 = vld [vmem:[#allocation5 + $0x3a0] sm:$0xff] }
  0x79   :  { %753 = vset.pattern.permute.xlu0 %v865_v2  ;;  %v433_v2 = vld [vmem:[#allocation5 + $0x520] sm:$0xff] }
  0x7a   :  { %256 = vperm.xlu0 %753, %v252_v4   ;;  %v325_v4 = vld [vmem:[#allocation5 + $0x1c0] sm:$0xff] }
  0xb4   :  { %v185_v7 = vpop.f32.mrf.mxu0  ;;  %v205_v8 = vpop.f32.mrf.mxu1 }
  0xb5   :  { %v186_v9 = vadd.f32 %v185_v7, %v160_v5  ;;  %v206_v10 = vadd.f32 %v205_v8, %v161_v6  ;;  %v382_v5 = vld [vmem:[#allocation5 + $0x388] sm:$0xff] }
  0xb6   :  { %v430_v6 = vld [vmem:[#allocation5 + $0x508] sm:$0xff] }
  0xb7   :  { %v940_v11 = vmax.f32 %v186_v9, 0.0  ;;  %v942_v12 = vmax.f32 %v206_v10, 0.0  ;;  %v274_v7 = vld [vmem:[#allocation5 + $0x28] sm:$0xff]  ;;  %v379_v9 = vld [vmem:[#allocation5 + $0x370] sm:$0xff] }
  0xb8   :  { %v322_v8 = vld [vmem:[#allocation5 + $0x1a8] sm:$0xff]  ;;  %v427_v10 = vld [vmem:[#allocation5 + $0x4f0] sm:$0xff] }
  0xb9   :  { %477 = vmatmul.f32.vlgmr.msrb.gmra.mxu0 %v940_v11  ;;  %497 = vmatmul.f32.vlgmr.msrb.gmra.mxu1 %v942_v12 }
  0xba   :  { %621 = vmatpush.msrb.mxu0 %v316_v13  ;;  %641 = vmatpush.msrb.mxu1 %v364_v14  ;;  %v271_v13 = vld [vmem:[#allocation5 + $0x10] sm:$0xff] }
  0xbb   :  { %v225_v19 = vpop.f32.mrf.mxu2  ;;  %v245_v20 = vpop.f32.mrf.mxu3  ;;  %v319_v14 = vld [vmem:[#allocation5 + $0x190] sm:$0xff] }
  0xbc   :  { %v226_v23 = vadd.f32 %v225_v19, %v162_v15  ;;  %v246_v24 = vadd.f32 %v245_v20, %v163_v16  ;;  %622 = vmatpush.msrb.mxu0 %v313_v17  ;;  %642 = vmatpush.msrb.mxu1 %v361_v18  ;;  %v376_v15 = vld [vmem:[#allocation5 + $0x358] sm:$0xff]  ;;  %v373_v17 = vld [vmem:[#allocation5 + $0x340] sm:$0xff]  ;;  %v370_v19 = vld [vmem:[#allocation5 + $0x328] sm:$0xff] }
  0xbd   :  { %v424_v16 = vld [vmem:[#allocation5 + $0x4d8] sm:$0xff]  ;;  %v421_v18 = vld [vmem:[#allocation5 + $0x4c0] sm:$0xff]  ;;  %v418_v20 = vld [vmem:[#allocation5 + $0x4a8] sm:$0xff] }
  0xbe   :  { %v946_v25 = vmax.f32 %v226_v23, 0.0  ;;  %v948_v26 = vmax.f32 %v246_v24, 0.0  ;;  %623 = vmatpush.msrb.mxu0 %v310_v21  ;;  %643 = vmatpush.msrb.mxu1 %v358_v22  ;;  %v367_v21 = vld [vmem:[#allocation5 + $0x310] sm:$0xff] }
  0xbf   :  { %v415_v22 = vld [vmem:[#allocation5 + $0x490] sm:$0xff] }
  0xc0   :  { %517 = vmatmul.f32.vlgmr.msrb.gmra.mxu2 %v946_v25  ;;  %537 = vmatmul.f32.vlgmr.msrb.gmra.mxu3 %v948_v26 }
  0xc1   :  { %624 = vmatpush.msrb.mxu0 %v307_v27  ;;  %644 = vmatpush.msrb.mxu1 %v355_v28 }
  0xc2   :  { %661 = vmatpush.msrb.mxu2 %v412_v29  ;;  %681 = vmatpush.msrb.mxu3 %v460_v30 }
  0xc3   :  { %557 = vmatmul.f32.vlgmr.msra.gmra.mxu0 %v940_v11  ;;  %645 = vmatpush.msrb.mxu1 %v352_v31 }
  0xc4   :  { %625 = vmatpush.msrb.mxu0 %v304_v32  ;;  %662 = vmatpush.msrb.mxu2 %v409_v33 }
  0xc5   :  { %682 = vmatpush.msrb.mxu3 %v457_v34  ;;  %577 = vmatmul.f32.vlgmr.msra.gmra.mxu1 %v942_v12 }
  0xc6   :  { %626 = vmatpush.msrb.mxu0 %v301_v35  ;;  %646 = vmatpush.msrb.mxu1 %v349_v36 }
  0xc7   :  { %663 = vmatpush.msrb.mxu2 %v406_v37  ;;  %683 = vmatpush.msrb.mxu3 %v454_v38 }
  0xc8   :  { %627 = vmatpush.msrb.mxu0 %v298_v39  ;;  %647 = vmatpush.msrb.mxu1 %v346_v40 }
  0xc9   :  { %664 = vmatpush.msrb.mxu2 %v403_v41  ;;  %684 = vmatpush.msrb.mxu3 %v451_v42  ;;  %v701_v42 = vld [vmem:[#allocation7] sm:$0x7] }
  0xca   :  { %597 = vmatmul.f32.vlgmr.msra.gmra.mxu2 %v946_v25  ;;  %617 = vmatmul.f32.vlgmr.msra.gmra.mxu3 %v948_v26 }
  0xcb   :  { %628 = vmatpush.msrb.mxu0 %v295_v43  ;;  %648 = vmatpush.msrb.mxu1 %v343_v44 }
  0xcc   :  { %665 = vmatpush.msrb.mxu2 %v400_v45  ;;  %685 = vmatpush.msrb.mxu3 %v448_v46  ;;  %v704_v46 = vperm.slane %v701_v42, 1 }
  0xcd   :  { %629 = vmatpush.msrb.mxu0 %v292_v47  ;;  %649 = vmatpush.msrb.mxu1 %v340_v48  ;;  %v703_v48 = vperm.slane %v701_v42, 0 }
  0xce   :  { %666 = vmatpush.msrb.mxu2 %v397_v49  ;;  %686 = vmatpush.msrb.mxu3 %v445_v50 }
  0xcf   :  { %630 = vmatpush.msrb.mxu0 %v289_v51  ;;  %650 = vmatpush.msrb.mxu1 %v337_v52 }
  0xd0   :  { %667 = vmatpush.msrb.mxu2 %v394_v53  ;;  %687 = vmatpush.msrb.mxu3 %v442_v54  ;;  %v715_v54 = vld [vmem:[#allocation8] sm:$0x7] }
  0xd1   :  { %631 = vmatpush.msrb.mxu0 %v286_v55  ;;  %651 = vmatpush.msrb.mxu1 %v334_v56 }
  0xd2   :  { %668 = vmatpush.msrb.mxu2 %v391_v57  ;;  %688 = vmatpush.msrb.mxu3 %v439_v58  ;;  %v718_v57 = vperm.slane %v715_v54, 1 }
  0xd3   :  { %632 = vmatpush.msrb.mxu0 %v283_v59  ;;  %652 = vmatpush.msrb.mxu1 %v331_v60  ;;  %v705_v59 = vperm.slane %v701_v42, 2 }
  0xd4   :  { %669 = vmatpush.msrb.mxu2 %v388_v61  ;;  %689 = vmatpush.msrb.mxu3 %v436_v62  ;;  %v717_v62 = vperm.slane %v715_v54, 0 }
  0xd5   :  { %633 = vmatpush.msrb.mxu0 %v280_v63  ;;  %653 = vmatpush.msrb.mxu1 %v328_v0 }
  0xd6   :  { %670 = vmatpush.msrb.mxu2 %v385_v1  ;;  %690 = vmatpush.msrb.mxu3 %v433_v2  ;;  %v719_v2 = vperm.slane %v715_v54, 2 }
  0xd7   :  { %634 = vmatpush.msrb.mxu0 %v277_v3  ;;  %654 = vmatpush.msrb.mxu1 %v325_v4 }
  0xd8   :  { %671 = vmatpush.msrb.mxu2 %v382_v5  ;;  %691 = vmatpush.msrb.mxu3 %v430_v6 }
  0xd9   :  { %635 = vmatpush.msrb.mxu0 %v274_v7  ;;  %655 = vmatpush.msrb.mxu1 %v322_v8  ;;  %v754_v8 = vld [vmem:[#allocation2] ss:$0 sm:$0xff] }
  0xda   :  { %672 = vmatpush.msrb.mxu2 %v379_v9  ;;  %692 = vmatpush.msrb.mxu3 %v427_v10 }
  0xdb   :  { %636 = vmatpush.msrb.mxu0 %v271_v13  ;;  %656 = vmatpush.msrb.mxu1 %v319_v14 }
  0xdc   :  { %673 = vmatpush.msrb.mxu2 %v376_v15  ;;  %693 = vmatpush.msrb.mxu3 %v424_v16 }
  0xdd   :  { %637 = vmatmul.f32.vlgmr.msrb.gmra.mxu0 %v940_v11  ;;  %657 = vmatmul.f32.vlgmr.msrb.gmra.mxu1 %v942_v12  ;;  %v253_v11 = vld [vmem:[%s971_s5] sm:$0x7] }
  0xde   :  { %674 = vmatpush.msrb.mxu2 %v373_v17  ;;  %694 = vmatpush.msrb.mxu3 %v421_v18  ;;  %v260_v24 = vperm.slane %v253_v11, 0  ;;  %v261_v27 = vperm.slane %v253_v11, 1  ;;  %v262_v38 = vperm.slane %v253_v11, 2 }
  0xe0   :  { %675 = vmatpush.msrb.mxu2 %v370_v19  ;;  %695 = vmatpush.msrb.mxu3 %v418_v20 }
  0xe2   :  { %676 = vmatpush.msrb.mxu2 %v367_v21  ;;  %696 = vmatpush.msrb.mxu3 %v415_v22 }
  0xe3   :  { %677 = vmatmul.f32.vlgmr.msrb.gmra.mxu2 %v946_v25  ;;  %697 = vmatmul.f32.vlgmr.msrb.gmra.mxu3 %v948_v26 }
  0xec   :  { %v257_v28 = vpop.permute.xlu0 %256 }
  0xed   :  { %v266_v30 = vmul.f32 %v260_v24, %v257_v28  ;;  %v267_v31 = vmul.f32 %v261_v27, %v257_v28  ;;  %v268_v41 = vmul.f32 %v262_v38, %v257_v28 }
 0x136   :  { %v478_v23 = vpop.f32.mrf.mxu0  ;;  %v498_v12 = vpop.f32.mrf.mxu1 }
 0x137   :  { %v479_v35 = vadd.f32 %v478_v23, %v266_v30 }
 0x139   :  { %v499_v26 = vadd.f32 %v498_v12, %v479_v35 }
 0x140   :  { %v558_v32 = vpop.f32.mrf.mxu0 }
 0x141   :  { %v559_v34 = vadd.f32 %v558_v32, %v267_v31 }
 0x142   :  { %v578_v36 = vpop.f32.mrf.mxu1 }
 0x143   :  { %v518_v29 = vpop.f32.mrf.mxu2  ;;  %v538_v33 = vpop.f32.mrf.mxu3  ;;  %v579_v37 = vadd.f32 %v578_v36, %v559_v34 }
 0x144   :  { %v519_v40 = vadd.f32 %v518_v29, %v499_v26 }
 0x146   :  { %v539_v47 = vadd.f32 %v538_v33, %v519_v40 }
 0x148   :  { %v709_v52 = vadd.f32 %v703_v48, %v539_v47 }
 0x14a   :  { %v712_v61 = vmax.f32 %v709_v52, 0.0 }
 0x14c   :  { %v723_v3 = vmul.f32 %v717_v62, %v712_v61 }
 0x14d   :  { %v598_v25 = vpop.f32.mrf.mxu2  ;;  %v618_v43 = vpop.f32.mrf.mxu3 }
 0x14e   :  { %v599_v39 = vadd.f32 %v598_v25, %v579_v37 }
 0x150   :  { %v619_v45 = vadd.f32 %v618_v43, %v599_v39 }
 0x152   :  { %v710_v50 = vadd.f32 %v704_v46, %v619_v45 }
 0x154   :  { %v713_v56 = vmax.f32 %v710_v50, 0.0 }
 0x156   :  { %v724_v0 = vmul.f32 %v718_v57, %v713_v56 }
 0x158   :  { %v726_v6 = vadd.f32 %v724_v0, %v723_v3 }
 0x15a   :  { %v638_v44 = vpop.f32.mrf.mxu0  ;;  %v658_v51 = vpop.f32.mrf.mxu1 }
 0x15b   :  { %v639_v49 = vadd.f32 %v638_v44, %v268_v41 }
 0x15d   :  { %v659_v53 = vadd.f32 %v658_v51, %v639_v49 }
 0x166   :  { %v678_v55 = vpop.f32.mrf.mxu2  ;;  %v698_v60 = vpop.f32.mrf.mxu3 }
 0x167   :  { %v679_v58 = vadd.f32 %v678_v55, %v659_v53 }
 0x169   :  { %v699_v63 = vadd.f32 %v698_v60, %v679_v58 }
 0x16b   :  { %v711_v1 = vadd.f32 %v705_v59, %v699_v63 }
 0x16d   :  { %v714_v4 = vmax.f32 %v711_v1, 0.0 }
 0x16f   :  { %v725_v5 = vmul.f32 %v719_v2, %v714_v4 }
 0x171   :  { %v727_v7 = vadd.f32 %v726_v6, %v725_v5 }
 0x173   :  { %728 = vadd.xlane.f32.xlu0 %v727_v7 }
 0x1e6   :  { %v729_v9 = vpop.xlane.xlu0 %728 }
 0x1e7   :  { %v734_v10 = vadd.f32 %v754_v8, %v729_v9 }
 0x1e9   :  { %736 = vst.msk [vmem:[%s975_s9] sm:$0xff] %vm735_vm0, %v734_v10 }
 0x1ea   :  { %741 = vsyncpa [#allocation4], 1 }
 0x1eb   :  { %742 = vsyncpa [#allocation6], 1 }
 0x1ec   :  { %743 = vsyncpa [#allocation9], 1 }

</bundles_post_ra>
